<compile_context>
chip_gen: v7x
topology: tpu7x:2x2x1
jax: 0.10.0
libtpu: 0.0.40
codegen_flags: <defaults>
</compile_context>

<pallas_src>
import functools

import jax
import jax.numpy as jnp
from jax import lax
from jax.experimental import pallas as pl
from jax.experimental.pallas import tpu as pltpu


def _round_up(v, m):
    return ((v + m - 1) // m) * m


def _cartesian_embed_kernel(idx_ref, table_ref, out_ref, *, res):
    # idx_ref:   (T, 2) int32, values in [0, res)
    # table_ref: (res, D) embedding table, VMEM-resident across all row tiles
    # out_ref:   (T, 2*D) output tile (true width, no lane padding)
    idx = idx_ref[...]                                         # (T, 2)
    t = idx_ref.shape[0]
    w = table_ref[...]                                         # (res, D)

    iota = lax.broadcasted_iota(jnp.int32, (t, res), 1)        # (T, res)
    oh0 = (iota == idx[:, 0:1]).astype(w.dtype)                # one-hot, coord 0
    oh1 = (iota == idx[:, 1:2]).astype(w.dtype)                # one-hot, coord 1

    e0 = jnp.dot(oh0, w, preferred_element_type=jnp.float32)   # (T, D)  MXU
    e1 = jnp.dot(oh1, w, preferred_element_type=jnp.float32)   # (T, D)  MXU

    out_ref[...] = jnp.concatenate([e0, e1], axis=-1).astype(out_ref.dtype)


def cartesian_embedding(x, table, *, tile_n=None):
    """x: (N, 2) coords in [0, 1); table: (res, embed_dim).
    Returns (N, 2*embed_dim) in the table's dtype, matching the PyTorch forward."""
    x = jnp.asarray(x, jnp.float32)
    table = jnp.asarray(table)
    n = x.shape[0]
    res, d = table.shape
    two_d = 2 * d
    out_dtype = table.dtype
    itemsize = jnp.dtype(out_dtype).itemsize

    # ---- wrapper-side index math: keep the kernel a pure gather ----
    idx = jnp.floor(x * jnp.float32(res)).astype(jnp.int32)    # (N, 2)
    # PyTorch nn.Embedding would raise on out-of-range indices; we clip instead.
    idx = jnp.clip(idx, 0, res - 1)

    # ---- per-generation VMEM budget (v7x: 64 MiB/TC; v5e/v6e: 128 MiB) ----
    try:
        vmem_cap = int(pltpu.get_tpu_info().vmem_capacity_bytes)
    except Exception:
        vmem_cap = 64 * 1024 * 1024                            # conservative fallback
    vmem_limit = min((vmem_cap * 3) // 4, 96 * 1024 * 1024)    # 48 MiB on v7x, 96 MiB on v5e/v6e

    # ---- tile size: large (amortize ~0.35us/step), multiple of 8, VMEM-bounded ----
    table_bytes = 2 * res * d * itemsize                       # worst case (double-buffered)
    tile_budget = max(1 << 20, vmem_limit // 2 - table_bytes)  # headroom for out double-buffer etc.
    per_row = 2 * two_d * itemsize                             # out tile, double-buffered
    per_row += 2 * res * itemsize                              # two (T, res) one-hot intermediates
    per_row += 2 * 2 * 4                                       # idx tile, double-buffered
    if tile_n is None:
        tile_n = min(tile_budget // max(per_row, 1), 4096)
    tile_n = max(8, min(int(tile_n), _round_up(n, 8)))
    tile_n = (tile_n // 8) * 8                                 # enforce (8, 128) sublane rule

    n_pad = _round_up(n, tile_n)
    if n_pad != n:
        idx = jnp.pad(idx, ((0, n_pad - n), (0, 0)))           # padded rows gather row 0

    grid = (n_pad // tile_n,)
    kernel = functools.partial(_cartesian_embed_kernel, res=res)

    out = pl.pallas_call(
        kernel,
        out_shape=jax.ShapeDtypeStruct((n_pad, two_d), out_dtype),
        grid_spec=pltpu.PrefetchScalarGridSpec(
            num_scalar_prefetch=0,
            grid=grid,
            in_specs=[
                pl.BlockSpec((tile_n, 2), lambda i: (i, 0)),   # per-tile indices
                pl.BlockSpec((res, d), lambda i: (0, 0)),      # resident raw table
            ],
            out_specs=pl.BlockSpec((tile_n, two_d), lambda i: (i, 0)),
        ),
        compiler_params=pltpu.CompilerParams(
            dimension_semantics=("parallel",),                 # shard N across TCs (v7x)
            vmem_limit_bytes=vmem_limit,
        ),
        cost_estimate=pl.CostEstimate(
            flops=2 * 2 * n_pad * res * d,                     # two (T,res)@(res,D) matmuls/tile
            transcendentals=0,
            bytes_accessed=n_pad * 2 * 4 + res * d * itemsize + n_pad * two_d * itemsize,
        ),
    )(idx, table)

    # Only a row slice (and only when N was padded); no lane slice / extra HBM pass.
    return out if n_pad == n else out[:n]


if __name__ == "__main__":
    key = jax.random.PRNGKey(0)
    k_x, k_w = jax.random.split(key)

    # Small shapes consistent with the module: N=8 nodes, res=16, embed_dim=32.
    N, RES, EMBED_DIM = 8, 16, 32

    # Node coordinates in [0, 1) (so floor(c*res) < res, as the module assumes).
    x = jax.random.uniform(k_x, (N, 2), dtype=jnp.float32, minval=0.0, maxval=0.999)

    # Embedding weights (nn.Embedding init ~ N(0, 1)), shape (res, embed_dim).
    table = jax.random.normal(k_w, (RES, EMBED_DIM), dtype=jnp.float32)

    out = cartesian_embedding(x, table)
    out = jax.block_until_ready(out)

    # Reference in plain JAX (same semantics as the PyTorch forward).
    idx = jnp.floor(x * RES).astype(jnp.int32)                 # (N, 2)
    ref = table[idx].reshape(N, 2 * EMBED_DIM)
    assert out.shape == (N, 2 * EMBED_DIM), out.shape
    assert out.dtype == table.dtype, out.dtype
    assert jnp.allclose(out, ref, atol=1e-6), "mismatch vs reference"

    print("KERNEL_OK")
</pallas_src>

<mosaic_0001>
module attributes {stable_mosaic.version = 11 : i64} {
  func.func @_cartesian_embed_kernel(%arg0: i32, %arg1: memref<8x2xi32, #tpu.memory_space<vmem>>, %arg2: memref<16x32xf32, #tpu.memory_space<vmem>>, %arg3: memref<8x64xf32, #tpu.memory_space<vmem>>) attributes {dimension_semantics = [#tpu.dimension_semantics<parallel>], iteration_bounds = array<i64: 1>, scalar_prefetch = 0 : i64, scratch_operands = 0 : i64, tpu.core_type = #tpu.core_type<tc>, window_params = [{transform_indices = @transform_0, window_bounds = array<i64: 8, 2>}, {pipeline_mode = #tpu.pipeline_mode<synchronous>, transform_indices = @transform_1, window_bounds = array<i64: 16, 32>}, {transform_indices = @transform_2, window_bounds = array<i64: 8, 64>}]} {
    %c0 = arith.constant 0 : index
    %c0_0 = arith.constant 0 : index
    %0 = vector.load %arg1[%c0, %c0_0] : memref<8x2xi32, #tpu.memory_space<vmem>>, vector<8x2xi32>
    %c0_1 = arith.constant 0 : index
    %c0_2 = arith.constant 0 : index
    %1 = vector.load %arg2[%c0_1, %c0_2] : memref<16x32xf32, #tpu.memory_space<vmem>>, vector<16x32xf32>
    %2 = tpu.iota {dimensions = array<i32: 1>} : vector<8x16xi32>
    %3 = vector.extract_strided_slice %0 {offsets = [0, 0], sizes = [8, 1], strides = [1, 1]} : vector<8x2xi32> to vector<8x1xi32>
    %4 = vector.broadcast %3 : vector<8x1xi32> to vector<8x16xi32>
    %5 = arith.cmpi eq, %2, %4 : vector<8x16xi32>
    %6 = arith.extui %5 : vector<8x16xi1> to vector<8x16xi32>
    %7 = arith.sitofp %6 : vector<8x16xi32> to vector<8x16xf32>
    %8 = vector.extract_strided_slice %0 {offsets = [0, 1], sizes = [8, 1], strides = [1, 1]} : vector<8x2xi32> to vector<8x1xi32>
    %9 = vector.broadcast %8 : vector<8x1xi32> to vector<8x16xi32>
    %10 = arith.cmpi eq, %2, %9 : vector<8x16xi32>
    %11 = arith.extui %10 : vector<8x16xi1> to vector<8x16xi32>
    %12 = arith.sitofp %11 : vector<8x16xi32> to vector<8x16xf32>
    %cst = arith.constant dense<0.000000e+00> : vector<8x32xf32>
    %13 = tpu.matmul %7, %1, %cst {dimension_numbers = #tpu.dot_dimension_numbers<[1], [0], [0], [1], [0, 0, 1, 1], [], []>} : vector<8x16xf32>, vector<16x32xf32>, vector<8x32xf32> -> vector<8x32xf32>
    %cst_3 = arith.constant dense<0.000000e+00> : vector<8x32xf32>
    %14 = tpu.matmul %12, %1, %cst_3 {dimension_numbers = #tpu.dot_dimension_numbers<[1], [0], [0], [1], [0, 0, 1, 1], [], []>} : vector<8x16xf32>, vector<16x32xf32>, vector<8x32xf32> -> vector<8x32xf32>
    %15 = tpu.concatenate %13, %14 in 1 : vector<8x32xf32>, vector<8x32xf32> -> vector<8x64xf32>
    %c0_4 = arith.constant 0 : index
    %c0_5 = arith.constant 0 : index
    %16 = vector.load %arg3[%c0_4, %c0_5] : memref<8x64xf32, #tpu.memory_space<vmem>>, vector<8x64xf32>
    tpu.vector_store %arg3[%c0_4, %c0_5], %15 {strides = array<i32>} : memref<8x64xf32, #tpu.memory_space<vmem>>, vector<8x64xf32>,
    return
  }
  func.func @transform_0(%arg0: i32) -> (i32, i32) {
    %c0_i32 = arith.constant 0 : i32
    %c0_i32_0 = arith.constant 0 : i32
    return %arg0, %c0_i32 : i32, i32
  }
  func.func @transform_1(%arg0: i32) -> (i32, i32) {
    %c0_i32 = arith.constant 0 : i32
    %c0_i32_0 = arith.constant 0 : i32
    %c0_i32_1 = arith.constant 0 : i32
    return %c0_i32, %c0_i32_0 : i32, i32
  }
  func.func @transform_2(%arg0: i32) -> (i32, i32) {
    %c0_i32 = arith.constant 0 : i32
    %c0_i32_0 = arith.constant 0 : i32
    return %arg0, %c0_i32 : i32, i32
  }
}

</mosaic_0001>

<bundles_post_ra>
// kernel: tpu_custom_call.1
= control target key start
LH: loop header
LB: loop body
LE: loop exit
PB: predicated region body
PF: predicated region fallthrough
CT: control target
= control target key end

     0   :  { %7 = vsyncpa [#allocation3], 0  ;;  %s356_s0 = inlined_call_operand.vmem [shape: s32[8,2], index: 0, kind: input, shape index: {}]   ;;  %s357_s1 = inlined_call_operand.hbm [shape: f32[16,32], index: 1, kind: input, shape index: {}]   ;;  %s358_s2 = inlined_call_operand.hbm [shape: f32[8,64], index: 2, kind: output, shape index: {}]  }
   0x1   :  { %8 = vsyncpa [#allocation4], 0  ;;  %s304_s9 = smov [#allocation2]   ;;  %s256_s13 = scalar_lea.hbm %s357_s1, 256 }
   0x2   :  { %s16_s10 = sshll.u32 %s304_s9, 4  ;;  %p257_p0 = scmp.ne.s32.totalorder %s357_s1, %s256_s13  ;;  %s17_s10 = int_to_ptr.vmem [resolvable:$true] %s16_s10 }
   0x3   :  { %p260_p1 = scmp.lt.u32.totalorder %s256_s13, %s357_s1 }
   0x5   :  { %p262_p2 = pnand %p260_p1, %p257_p0 }
   0x7   :  { %265 = shalt.err (!%p262_p2)
}
   0x8   :  { %s266_s18 = scalar_lea.vmem %s17_s10, 256  ;;  %p271_p4 = scmp.lt.s32.totalorder %s17_s10, %s17_s10 }
   0x9   :  { %p267_p3 = scmp.ne.s32.totalorder %s17_s10, %s266_s18  ;;  %p272_p5 = scmp.lt.s32.totalorder %s266_s18, %s266_s18 }
   0xb   :  { %p273_p6 = por %p272_p5, %p271_p4 }
   0xd   :  { %p274_p7 = pnand %p273_p6, %p267_p3 }
   0xf   :  { %277 = shalt.err (!%p274_p7)
}
  0x10   :  { %s305_s19 = smov 128   ;;  %s306_s20 = smov 8  }
  0x11   :  { %22 = dma.hbm_to_vmem [thread:$0]  %s357_s1, 256, %s17_s10, [#allocation3], %s305_s19, %s305_s19, %s306_s20  }
  0x12   :  { %300 = dma.done.wait [#allocation3], 256  }
  0x13   :  { %301 = vsyncadd [#allocation3], 4294967040  ;;  %v307_v0 = vmov 1   ;;  %v308_v1 = vmov 0.0|0.0   ;;  %v26_v2 = vld [vmem:[%s356_s0] sm:$0xff]  ;;  %v28_v4 = vld [vmem:[#allocation2 + $0x8] sm:$0xff]  ;;  %v29_v8 = vlaneseq }
  0x14   :  { %253 = vset.pattern.permute.xlu0 %v307_v0  ;;  %240 = vmatprep.subr.bf16.mxu1 %v308_v1  ;;  %v27_v3 = vld [vmem:[#allocation2] sm:$0xff]  ;;  %vm309_vm0 = vmmov 0   ;;  %v310_v6 = vmov 0.0   ;;  %v311_v7 = vmov 0   ;;  %vm43_vm1 = vcmask 130048   ;;  %s312_s0 = smov 32  }
  0x15   :  { %237 = vmatprep.subr.bf16.mxu0 %v308_v1  ;;  %38 = vperm.xlu0 %253, %v26_v2   ;;  %v238_v5 = vpack.c.bf16 %v28_v4, %v27_v3  ;;  %v30_v9 = vand.u32 127, %v29_v8  ;;  %s313_s1 = smov [#allocation5]   ;;  %vm194_vm4 = vcmask 261120   ;;  %vm196_vm5 = vcmask 523264  }
  0x16   :  { %234 = vmatprep.mubr.msk.f32.mxu1 %vm309_vm0, %v310_v6  ;;  %227 = vmatprep.mubr.msk.f32.mxu0 %vm309_vm0, %v310_v6  ;;  %s204_s25 = sshll.u32 %s313_s1, 4  ;;  %s205_s25 = int_to_ptr.vmem [resolvable:$true] %s204_s25 }
  0x17   :  { %242 = vmatpush3.bf16.msra.mxu1 %v238_v5  ;;  %239 = vmatpush3.bf16.msra.mxu0 %v238_v5  ;;  %s278_s26 = scalar_lea.vmem %s205_s25, 128  ;;  %p283_p9 = scmp.lt.s32.totalorder %s205_s25, %s205_s25 }
  0x18   :  { %p279_p8 = scmp.ne.s32.totalorder %s205_s25, %s278_s26  ;;  %p284_p10 = scmp.lt.s32.totalorder %s278_s26, %s278_s26 }
  0x19   :  { %254 = vset.pattern.permute.xlu0 %v311_v7 }
  0x1a   :  { %32 = vperm.xlu0 %254, %v26_v2   ;;  %p285_p11 = por %p284_p10, %p283_p9 }
  0x1c   :  { %p286_p12 = pnand %p285_p11, %p279_p8 }
  0x1e   :  { %255 = vset.pattern.permute.xlu0 %v307_v0 }
  0x94   :  { %v39_v10 = vpop.permute.xlu0 %38 }
  0x95   :  { %vm40_vm2 = vcmp.eq.s32.totalorder %v30_v9, %v39_v10 }
  0x96   :  { %v214_v11 = vsel %vm40_vm2, 1.0, %v310_v6 }
  0x97   :  { %235 = vmatmul.mubr.msk.f32.vlgmr.msra.gmra.mrb[0].mxu1 %vm43_vm1, %v214_v11 }
  0x99   :  { %v33_v12 = vpop.permute.xlu0 %32 }
  0x9a   :  { %vm34_vm3 = vcmp.eq.s32.totalorder %v30_v9, %v33_v12 }
  0x9b   :  { %v213_v13 = vsel %vm34_vm3, 1.0, %v310_v6 }
  0x9c   :  { %228 = vmatmul.mubr.msk.f32.vlgmr.msra.gmra.mrb[0].mxu0 %vm43_vm1, %v213_v13 }
 0x16a   :  { %v186_v14 = vpop.f32.mrb[0].mxu1 }
 0x16b   :  { %191 = vrot.lane.b32.xlu1 %v186_v14, %s312_s0  ;;  %v236_v15 = vpop.f32.mrb[1].mxu1 }
 0x16f   :  { %v113_v16 = vpop.f32.mrb[0].mxu0 }
 0x170   :  { %v229_v17 = vpop.f32.mrb[1].mxu0 }
 0x1dd   :  { %v192_v18 = vpop.permute.xlu1 %191 }
 0x1de   :  { %v195_v19 = vsel %vm194_vm4, %v113_v16, %v192_v18 }
 0x1df   :  { %197 = vst.msk [vmem:[#allocation5] sm:$0xff] %vm196_vm5, %v195_v19 }
 0x1e0   :  { %289 = shalt.err (!%p286_p12)
}
 0x1e1   :  { %s290_s29 = scalar_lea.hbm %s358_s2, 128 }
 0x1e2   :  { %p291_p13 = scmp.ne.s32.totalorder %s358_s2, %s290_s29  ;;  %p294_p0 = scmp.lt.u32.totalorder %s290_s29, %s358_s2 }
 0x1e4   :  { %p296_p1 = pnand %p294_p0, %p291_p13 }
 0x1e6   :  { %299 = shalt.err (!%p296_p1)
}
 0x1e7   :  { %207 = dma.vmem_to_hbm [thread:$0]  %s205_s25, 128, %s358_s2, [#allocation4]  }
 0x1e8   :  { %302 = dma.done.wait [#allocation4], 128  }
 0x1e9   :  { %303 = vsyncadd [#allocation4], 4294967168 }
 0x1ea   :  { %211 = vsyncpa [#allocation3], 1 }
 0x1eb   :  { %212 = vsyncpa [#allocation4], 1 }

</bundles_post_ra>
